<compile_context>
chip_gen: v7x
topology: tpu7x:2x2x1
jax: 0.10.0
libtpu: 0.0.40
codegen_flags: <defaults>
</compile_context>

<pallas_src>
import math

import jax
import jax.numpy as jnp
from jax.experimental import pallas as pl
from jax.experimental.pallas import tpu as pltpu


def _get_pad(size: int, multiple: int):
    new_size = math.ceil(size / multiple) * multiple
    pad_size = new_size - size
    pad_left = pad_size // 2
    pad_right = pad_size - pad_left
    return pad_left, pad_right


# Live (double-buffered) block bytes target; leaves headroom for in-kernel
# concat intermediates inside the 32 MiB scoped-VMEM limit set below.
_BLOCK_BYTES_BUDGET = 16 * 1024 * 1024
_VMEM_LIMIT_BYTES = 32 * 1024 * 1024


def _pick_cb(N: int, C: int, per_channel_bytes: int) -> int:
    """Largest channel-block size Cb that (a) divides C, (b) fits the VMEM
    budget with double buffering, (c) leaves >=2 grid steps when N == 1 so
    both v7x TensorCores get work."""
    best = 1
    for d in range(C, 0, -1):
        if C % d != 0:
            continue
        if 2 * d * per_channel_bytes > _BLOCK_BYTES_BUDGET:
            continue
        if N == 1 and C > 1 and (C // d) < 2:
            continue
        best = d
        break
    return best


def center_padding(x: jax.Array, multiple: int) -> jax.Array:
    """Pallas implementation of CenterPadding.forward for 4-D NCHW inputs."""
    N, C, H, W = x.shape
    ph_l, ph_r = _get_pad(H, multiple)
    pw_l, pw_r = _get_pad(W, multiple)
    Hp = H + ph_l + ph_r
    Wp = W + pw_l + pw_r

    # No padding needed -> identity (matches F.pad with all-zero pads).
    if ph_l == 0 and ph_r == 0 and pw_l == 0 and pw_r == 0:
        return x

    itemsize = jnp.dtype(x.dtype).itemsize
    per_channel_bytes = (H * W + Hp * Wp) * itemsize
    Cb = _pick_cb(N, C, per_channel_bytes)
    grid = (N, C // Cb)

    def kernel(x_ref, o_ref):
        # x_ref: (1, Cb, H, W), o_ref: (1, Cb, Hp, Wp) in VMEM.
        xv = x_ref[...]
        dt = xv.dtype

        # Pad along W (lane dim) by concatenating zero column strips.
        w_pieces = []
        if pw_l > 0:
            w_pieces.append(jnp.zeros((1, Cb, H, pw_l), dt))
        w_pieces.append(xv)
        if pw_r > 0:
            w_pieces.append(jnp.zeros((1, Cb, H, pw_r), dt))
        xw = jnp.concatenate(w_pieces, axis=3) if len(w_pieces) > 1 else xv

        # Pad along H (sublane dim) by concatenating zero row blocks.
        h_pieces = []
        if ph_l > 0:
            h_pieces.append(jnp.zeros((1, Cb, ph_l, Wp), dt))
        h_pieces.append(xw)
        if ph_r > 0:
            h_pieces.append(jnp.zeros((1, Cb, ph_r, Wp), dt))
        padded = jnp.concatenate(h_pieces, axis=2) if len(h_pieces) > 1 else xw

        # Single unmasked full-tile store.
        o_ref[...] = padded

    cost = pl.CostEstimate(
        flops=0,
        transcendentals=0,
        bytes_accessed=N * C * (H * W + Hp * Wp) * itemsize,
    )

    return pl.pallas_call(
        kernel,
        out_shape=jax.ShapeDtypeStruct((N, C, Hp, Wp), x.dtype),
        grid=grid,
        in_specs=[pl.BlockSpec((1, Cb, H, W), lambda n, c: (n, c, 0, 0))],
        out_specs=pl.BlockSpec((1, Cb, Hp, Wp), lambda n, c: (n, c, 0, 0)),
        compiler_params=pltpu.CompilerParams(
            dimension_semantics=("parallel", "parallel"),
            vmem_limit_bytes=_VMEM_LIMIT_BYTES,
        ),
        cost_estimate=cost,
    )(x)


if __name__ == "__main__":
    key = jax.random.PRNGKey(0)
    # Small NCHW input; multiple=7 gives asymmetric padding (16 -> 21: 2 left, 3 right).
    N, C, H, W = 2, 4, 16, 16
    multiple = 7
    x = jax.random.normal(key, (N, C, H, W), dtype=jnp.float32)

    out = center_padding(x, multiple)
    out = jax.block_until_ready(out)

    # Reference check (plain JAX), mirrors torch.nn.functional.pad semantics.
    ph_l, ph_r = _get_pad(H, multiple)
    pw_l, pw_r = _get_pad(W, multiple)
    ref = jnp.pad(x, ((0, 0), (0, 0), (ph_l, ph_r), (pw_l, pw_r)))
    assert out.shape == ref.shape, (out.shape, ref.shape)
    assert jnp.allclose(out, ref), "mismatch vs jnp.pad reference"

    # Also exercise the no-padding fast path.
    x2 = jax.random.normal(key, (1, 2, 14, 21), dtype=jnp.float32)
    out2 = jax.block_until_ready(center_padding(x2, 7))
    assert out2.shape == x2.shape and jnp.allclose(out2, x2)

    print("KERNEL_OK")
</pallas_src>

<mosaic_0001>
module attributes {stable_mosaic.version = 11 : i64} {
  func.func @kernel(%arg0: i32, %arg1: i32, %arg2: memref<1x4x16x16xf32, #tpu.memory_space<vmem>>, %arg3: memref<1x4x21x21xf32, #tpu.memory_space<vmem>>) attributes {dimension_semantics = [#tpu.dimension_semantics<parallel>, #tpu.dimension_semantics<parallel>], iteration_bounds = array<i64: 2, 1>, scalar_prefetch = 0 : i64, scratch_operands = 0 : i64, tpu.core_type = #tpu.core_type<tc>, window_params = [{transform_indices = @transform_0, window_bounds = array<i64: 1, 4, 16, 16>}, {transform_indices = @transform_1, window_bounds = array<i64: 1, 4, 21, 21>}]} {
    %c0 = arith.constant 0 : index
    %c0_0 = arith.constant 0 : index
    %c0_1 = arith.constant 0 : index
    %c0_2 = arith.constant 0 : index
    %0 = vector.load %arg2[%c0, %c0_0, %c0_1, %c0_2] : memref<1x4x16x16xf32, #tpu.memory_space<vmem>>, vector<1x4x16x16xf32>
    %cst = arith.constant 0.000000e+00 : f32
    %1 = vector.broadcast %cst : f32 to vector<1x4x16x2xf32>
    %cst_3 = arith.constant 0.000000e+00 : f32
    %2 = vector.broadcast %cst_3 : f32 to vector<1x4x16x3xf32>
    %3 = tpu.concatenate %1, %0, %2 in 3 : vector<1x4x16x2xf32>, vector<1x4x16x16xf32>, vector<1x4x16x3xf32> -> vector<1x4x16x21xf32>
    %cst_4 = arith.constant 0.000000e+00 : f32
    %4 = vector.broadcast %cst_4 : f32 to vector<1x4x2x21xf32>
    %cst_5 = arith.constant 0.000000e+00 : f32
    %5 = vector.broadcast %cst_5 : f32 to vector<1x4x3x21xf32>
    %6 = tpu.concatenate %4, %3, %5 in 2 : vector<1x4x2x21xf32>, vector<1x4x16x21xf32>, vector<1x4x3x21xf32> -> vector<1x4x21x21xf32>
    %c0_6 = arith.constant 0 : index
    %c0_7 = arith.constant 0 : index
    %c0_8 = arith.constant 0 : index
    %c0_9 = arith.constant 0 : index
    %7 = vector.load %arg3[%c0_6, %c0_7, %c0_8, %c0_9] : memref<1x4x21x21xf32, #tpu.memory_space<vmem>>, vector<1x4x21x21xf32>
    tpu.vector_store %arg3[%c0_6, %c0_7, %c0_8, %c0_9], %6 {strides = array<i32>} : memref<1x4x21x21xf32, #tpu.memory_space<vmem>>, vector<1x4x21x21xf32>,
    return
  }
  func.func @transform_0(%arg0: i32, %arg1: i32) -> (i32, i32, i32, i32) {
    %c0_i32 = arith.constant 0 : i32
    %c0_i32_0 = arith.constant 0 : i32
    %c0_i32_1 = arith.constant 0 : i32
    return %arg0, %arg1, %c0_i32, %c0_i32_0 : i32, i32, i32, i32
  }
  func.func @transform_1(%arg0: i32, %arg1: i32) -> (i32, i32, i32, i32) {
    %c0_i32 = arith.constant 0 : i32
    %c0_i32_0 = arith.constant 0 : i32
    %c0_i32_1 = arith.constant 0 : i32
    return %arg0, %arg1, %c0_i32, %c0_i32_0 : i32, i32, i32, i32
  }
}

</mosaic_0001>

<bundles_post_ra>
// kernel: tpu_custom_call.1
= control target key start
LH: loop header
LB: loop body
LE: loop exit
PB: predicated region body
PF: predicated region fallthrough
CT: control target
= control target key end

     0   :  { %6 = vsyncpa [#allocation3], 0  ;;  %s728_s0 = inlined_call_operand.hbm [shape: f32[2,4,16,16], index: 0, kind: input, shape index: {}]   ;;  %s729_s1 = inlined_call_operand.vmem [shape: f32[2,4,21,21], index: 1, kind: output, shape index: {}]  }
   0x1   :  { %8 = vsyncpa [#allocation3 + $0x1], 0  ;;  %s550_s6 = smov 0   ;;  %s552_s7 = smov 0  }
   0x2   :  { %s554_s8 = smov 0   ;;  %s556_s9 = smov 0  }
   0x3   :  { %s558_s10 = smov 0   ;;  %s560_s11 = smov 0  }
   0x4 LB: > { %s382_s12 = sadd.s32 4294967295, %s534_s11   ;;  %s26_s13 = sadd.s32 1, %s530_s10  ;;  %s534_s11 = sphi %s560_s11, %s14_s11   ;;  %s530_s10 = sphi %s558_s10, %s737_s10   ;;  %s526_s9 = sphi %s556_s9, %s736_s9   ;;  %s522_s8 = sphi %s554_s8, %s735_s8   ;;  %s518_s7 = sphi %s552_s7, %s734_s7   ;;  %s514_s6 = sphi %s550_s6, %s733_s6  }
   0x5   : > { %p28_p0 = scmp.ge.s32.totalorder %s26_s13, 2  ;;  %s35_s14 = sadd.s32 1, %s522_s8 }
   0x6   : > { %p42_p1 = scmp.ne.s32.totalorder %s522_s8, %s518_s7  ;;  %p43_p2 = scmp.eq.s32.totalorder %s534_s11, 0 }
   0x7   : > { %s739_s13 = smov (%p28_p0, %s26_s13), 0  ;;  %p48_p4 = scmp.ne.s32.totalorder %s518_s7, %s514_s6 }
   0x8   : > { %p586_p3 = por %p43_p2, %p42_p1  ;;  %s30_s16 = ssub.s32 %s530_s10, %s739_s13 }
   0x9   : > { %p49_p5 = scmp.eq.s32.totalorder %s382_s12, 0  ;;  %p33_p6 = scmp.eq.s32.totalorder %s30_s16, 0 }
   0xa   : > { %p402_p8 = scmp.lt.s32.totalorder %s534_s11, 2  ;;  %s100_s19 = sand.u32 1, %s522_s8  }
   0xb   : > { %p593_p7 = por %p49_p5, %p48_p4  ;;  %s394_s20 = sshll.u32 %s530_s10, 10 }
   0xc   : > { %s599_s18 = scalar_select %p33_p6, %s522_s8, %s35_s14  }
   0xd   : > { %s386_s21 = sshll.u32 %s100_s19, 6  ;;  %s606_s24 = scalar_lea.hbm %s728_s0, %s394_s20 }
   0xe   : > { %s104_s25 = scalar_lea.vmem [#allocation2], %s386_s21  ;;  %p610_p9 = pnand %p402_p8, %p586_p3 }
   0xf   : > { %s114_s26 = sshll.u32 %s104_s25, 4  ;;  %s616_s28 = scalar_lea.sflag [#allocation3], %s100_s19  ;;  %s614_s26 = int_to_ptr.vmem [resolvable:$true] %s114_s26 }
  0x10   : > { %s454_s29 = scalar_lea.hbm %s606_s24, 1024  ;;  %p456_p11 = pneg %p610_p9 }
  0x11   : > { %p455_p10 = scmp.ne.s32.totalorder %s606_s24, %s454_s29  ;;  %s459_s3 = scalar_lea.hbm %s728_s0, 2048 }
  0x12   : > { %p460_p0 = scmp.lt.u32.totalorder %s606_s24, %s728_s0  ;;  %p461_p1 = scmp.lt.u32.totalorder %s459_s3, %s454_s29 }
  0x13   : > { %p457_p12 = pnand %p456_p11, %p455_p10  ;;  %p463_p3 = scmp.lt.u32.totalorder %s454_s29, %s606_s24 }
  0x14   : > { %p462_p2 = por %p461_p1, %p460_p0 }
  0x15   : > { %p458_p13 = pneg %p457_p12 }
  0x16   : > { %p464_p4 = por %p463_p3, %p462_p2 }
  0x18   : > { %p465_p5 = pnand %p464_p4, %p458_p13 }
  0x1a   : > { %468 = shalt.err (!%p465_p5)
}
  0x1b   : > { %s469_s6 = scalar_lea.vmem %s614_s26, 1024  ;;  %s536_s12 = smov [#allocation2]  }
  0x1c   : > { %p470_p6 = scmp.ne.s32.totalorder %s614_s26, %s469_s6  ;;  %s474_s14 = sshll.u32 %s536_s12, 4  ;;  %s475_s14 = int_to_ptr.vmem [resolvable:$false] %s474_s14 }
  0x1d   : > { %s476_s15 = scalar_lea.vmem %s475_s14, 2048  ;;  %p477_p12 = scmp.lt.s32.totalorder %s614_s26, %s475_s14 }
  0x1e   : > { %p472_p8 = pnand %p470_p6, %p456_p11  ;;  %p478_p0 = scmp.lt.s32.totalorder %s476_s15, %s469_s6 }
  0x20   : > { %p473_p10 = pneg %p472_p8  ;;  %p479_p1 = por %p478_p0, %p477_p12 }
  0x22   : > { %p480_p2 = pnand %p479_p1, %p473_p10 }
  0x24   : > { %483 = shalt.err (!%p480_p2)
}
  0x25   : > { %s537_s16 = smov 128   ;;  %s538_s19 = smov 8  }
  0x26   : > { %401 = dma.hbm_to_vmem [thread:$0]  (!%p610_p9), %s606_s24, 1024, %s614_s26, %s616_s28, %s537_s16, %s537_s16, %s538_s19  }
  0x27   : > { %p389_p11 = scmp.ge.s32.totalorder %s534_s11, 1  ;;  %p122_p13 = scmp.lt.s32.totalorder %s534_s11, 3 }
  0x29   : > { %p123_p3 = pnand %p389_p11, %p122_p13 }
  0x2a   : > { %s128_s20 = sand.u32 (!%p123_p3), 1, %s518_s7  }
  0x2b   : > { %126 = sbr.rel (%p123_p3) target bundleno = 186 (0xba), region = 24  ;;  %s390_s21 = sshll.u32 (!%p123_p3), %s128_s20, 6 }
  0x2c   : > { %s129_s22 = scalar_lea.sflag (!%p123_p3), [#allocation3], %s128_s20  ;;  %s132_s23 = scalar_lea.vmem (!%p123_p3), [#allocation2], %s390_s21 }
  0x32   : > { %509 = dma.done.wait (%p593_p7), %s129_s22, 1024  }
  0x33   : > { %511 = vsyncadd (%p593_p7), %s129_s22, 4294966272  ;;  %v170_v0 = vld [vmem:[%s132_s23 + $0x10] sm:$0xff]  ;;  %v168_v1 = vld [vmem:[%s132_s23] sm:$0xff]  ;;  %s539_s25 = smov 2   ;;  %p158_p7 = scmp.lt.s32.totalorder %s526_s9, 1  ;;  %vm208_vm0 = vcmask 15360  }
  0x34   : > { %188 = vrot.lane.b32.xlu1 %v170_v0, %s539_s25  ;;  %184 = vrot.lane.b32.xlu0 %v168_v1, %s539_s25  ;;  %v171_v2 = vld [vmem:[%s132_s23 + $0x18] sm:$0xff]  ;;  %v169_v3 = vld [vmem:[%s132_s23 + $0x8] sm:$0xff]  ;;  %vm217_vm1 = vcmask 146432   ;;  %vm234_vm2 = vcmask 1041408   ;;  %vm267_vm3 = vcmask 171008   ;;  %vm270_vm4 = vcmask 167936  }
  0x35   : > { %v173_v4 = vld [vmem:[%s132_s23 + $0x28] sm:$0xff]  ;;  %v172_v5 = vld [vmem:[%s132_s23 + $0x20] sm:$0xff]  ;;  %v175_v6 = vld [vmem:[%s132_s23 + $0x38] sm:$0xff]  ;;  %s741_s9 = smov (!%p158_p7, %s526_s9), 1 }
  0x36   : > { %v174_v7 = vld [vmem:[%s132_s23 + $0x30] sm:$0xff]  ;;  %s395_s17 = smul.u32 96, %s741_s9 }
  0x38   : > { %190 = vrot.lane.b32.xlu1 %v171_v2, %s539_s25  ;;  %186 = vrot.lane.b32.xlu0 %v169_v3, %s539_s25  ;;  %s660_s27 = scalar_lea.vmem %s729_s1, %s395_s17 }
  0x3c   : > { %194 = vrot.lane.b32.xlu1 %v173_v4, %s539_s25  ;;  %192 = vrot.lane.b32.xlu0 %v172_v5, %s539_s25 }
  0x40   : > { %198 = vrot.lane.b32.xlu1 %v175_v6, %s539_s25  ;;  %196 = vrot.lane.b32.xlu0 %v174_v7, %s539_s25 }
  0xa6   : > { %v189_v8 = vpop.permute.xlu1 %188  ;;  %v185_v9 = vpop.permute.xlu0 %184 }
  0xa7   : > { %v211_v10 = vsel %vm208_vm0, 0.0, %v189_v8  ;;  %v209_v11 = vsel %vm208_vm0, 0.0, %v185_v9 }
  0xa8   : > { %v220_v12 = vsel %vm217_vm1, %v211_v10, 0.0  ;;  %v218_v13 = vsel %vm217_vm1, %v209_v11, 0.0 }
  0xa9   : > { %v238_v14 = vrot.slane %v220_v12, 6  ;;  %v235_v15 = vrot.slane %v218_v13, 6 }
  0xaa   : > { %v191_v16 = vpop.permute.xlu1 %190  ;;  %v187_v17 = vpop.permute.xlu0 %186 }
  0xab   : > { %v260_v18 = vsel %vm234_vm2, 0.0, %v238_v14  ;;  %v259_v19 = vsel %vm234_vm2, 0.0, %v235_v15  ;;  %v212_v20 = vsel %vm208_vm0, 0.0, %v191_v16  ;;  %v210_v21 = vsel %vm208_vm0, 0.0, %v187_v17 }
  0xac   : > { %272 = vst.msk [vmem:[%s660_s27 + $0x18] sm:$0xff] %vm267_vm3, %v260_v18  ;;  %268 = vst.msk [vmem:[%s660_s27] sm:$0xff] %vm267_vm3, %v259_v19  ;;  %v221_v22 = vsel %vm217_vm1, %v212_v20, 0.0  ;;  %v219_v23 = vsel %vm217_vm1, %v210_v21, 0.0 }
  0xad   : > { %v239_v24 = vrot.slane %v221_v22, 6  ;;  %v236_v25 = vrot.slane %v219_v23, 6 }
  0xae   : > { %v195_v26 = vpop.permute.xlu1 %194  ;;  %v193_v27 = vpop.permute.xlu0 %192 }
  0xaf   : > { %v240_v28 = vsel %vm234_vm2, %v238_v14, %v239_v24  ;;  %v264_v29 = vsel %vm234_vm2, %v239_v24, 0.0  ;;  %v237_v30 = vsel %vm234_vm2, %v235_v15, %v236_v25  ;;  %v263_v31 = vsel %vm234_vm2, %v236_v25, 0.0 }
  0xb0   : > { %273 = vst.msk [vmem:[%s660_s27 + $0x20] sm:$0xff] %vm267_vm3, %v240_v28  ;;  %269 = vst.msk [vmem:[%s660_s27 + $0x8] sm:$0xff] %vm267_vm3, %v237_v30  ;;  %v214_v32 = vsel %vm208_vm0, 0.0, %v195_v26  ;;  %v213_v33 = vsel %vm208_vm0, 0.0, %v193_v27 }
  0xb1   : > { %274 = vst.msk [vmem:[%s660_s27 + $0x28] sm:$0x1f] %vm270_vm4, %v264_v29  ;;  %271 = vst.msk [vmem:[%s660_s27 + $0x10] sm:$0x1f] %vm270_vm4, %v263_v31  ;;  %v223_v34 = vsel %vm217_vm1, %v214_v32, 0.0  ;;  %v222_v35 = vsel %vm217_vm1, %v213_v33, 0.0 }
  0xb2   : > { %v242_v36 = vrot.slane %v223_v34, 6  ;;  %v241_v37 = vrot.slane %v222_v35, 6  ;;  %v199_v38 = vpop.permute.xlu1 %198  ;;  %v197_v39 = vpop.permute.xlu0 %196 }
  0xb3   : > { %v216_v40 = vsel %vm208_vm0, 0.0, %v199_v38  ;;  %v215_v41 = vsel %vm208_vm0, 0.0, %v197_v39 }
  0xb4   : > { %v265_v42 = vsel %vm234_vm2, %v242_v36, 0.0  ;;  %v243_v43 = vsel %vm234_vm2, %v241_v37, %v242_v36  ;;  %v261_v44 = vsel %vm234_vm2, 0.0, %v241_v37  ;;  %v225_v45 = vsel %vm217_vm1, %v216_v40, 0.0 }
  0xb5   : > { %277 = vst.msk [vmem:[%s660_s27 + $0x40] sm:$0x1f] %vm270_vm4, %v265_v42  ;;  %v245_v46 = vrot.slane %v225_v45, 6  ;;  %v224_v47 = vsel %vm217_vm1, %v215_v41, 0.0 }
  0xb6   : > { %275 = vst.msk [vmem:[%s660_s27 + $0x30] sm:$0xff] %vm267_vm3, %v261_v44  ;;  %276 = vst.msk [vmem:[%s660_s27 + $0x38] sm:$0xff] %vm267_vm3, %v243_v43  ;;  %v244_v48 = vrot.slane %v224_v47, 6 }
  0xb7   : > { %v266_v49 = vsel %vm234_vm2, %v245_v46, 0.0 }
  0xb8   : > { %280 = vst.msk [vmem:[%s660_s27 + $0x58] sm:$0x1f] %vm270_vm4, %v266_v49  ;;  %v246_v50 = vsel %vm234_vm2, %v244_v48, %v245_v46  ;;  %v262_v51 = vsel %vm234_vm2, 0.0, %v244_v48 }
  0xb9   : > { %278 = vst.msk [vmem:[%s660_s27 + $0x48] sm:$0xff] %vm267_vm3, %v262_v51  ;;  %279 = vst.msk [vmem:[%s660_s27 + $0x50] sm:$0xff] %vm267_vm3, %v246_v50 }
  0xba PF: > { %s14_s11 = sadd.s32 1, %s534_s11   ;;  %s733_s6 = smov %s518_s7 }
  0xbb   : > { %p11_p9 = scmp.ge.s32.totalorder %s14_s11, 4   ;;  %s734_s7 = smov %s522_s8 }
  0xbc   : > { %s735_s8 = smov %s599_s18  ;;  %s736_s9 = smov %s530_s10 }
  0xbd   : > { %s737_s10 = smov %s739_s13  ;;  %13 = sbr.rel (!%p11_p9) target bundleno = 4 (0x4), region = 64 }
  0xc4   :  { %313 = vsyncpa [#allocation3], 1 }
  0xc5   :  { %315 = vsyncpa [#allocation3 + $0x1], 1 }

</bundles_post_ra>
